<compile_context>
chip_gen: v7x
topology: tpu7x:2x2x1
jax: 0.10.0
libtpu: 0.0.40
codegen_flags: <defaults>
</compile_context>

<pallas_src>
import functools

import jax
import jax.numpy as jnp
from jax.experimental import pallas as pl
from jax.experimental.pallas import tpu as pltpu


# ---------------------------------------------------------------------------
# Fused forward kernel
# ---------------------------------------------------------------------------
def _cnn1d_fused_kernel(x_ref, w1_ref, b1_ref, w2_ref, b2_ref,
                        wf1_ref, bf1_ref, wf2_ref, bf2_ref,
                        o_ref, col1_ref, col2_ref, *, K):
    f32 = jnp.float32

    def conv_relu_pool(x3, col_ref, w_ref, b_ref):
        # x3: (bt, Lc, Ci)   col_ref: (bt, Lc, K*Ci)   w_ref: (K*Ci, Co)   b_ref: (1, Co)
        bt, Lc, Ci = x3.shape
        Co = w_ref.shape[1]
        zrow = jnp.zeros((bt, 1, Ci), f32)
        # Build the Conv1d(kernel=K, padding=1) im2col directly in VMEM scratch with
        # lane-slice stores: column block k holds the input shifted by (k-1), with a
        # single zero halo row at the boundary (no full-buffer zeroing).
        for k in range(K):                                  # static unroll (K == 3)
            lo, hi = k * Ci, (k + 1) * Ci
            if k == 0:                                      # shift -1
                col_ref[:, :1, lo:hi] = zrow
                col_ref[:, 1:, lo:hi] = x3[:, :Lc - 1, :]
            elif k == K - 1:                                # shift +1
                col_ref[:, :Lc - 1, lo:hi] = x3[:, 1:, :]
                col_ref[:, Lc - 1:, lo:hi] = zrow
            else:                                           # shift 0
                col_ref[:, :, lo:hi] = x3
        # ONE MXU matmul per conv layer (contraction K*Ci) -> lane-dense Co output.
        acc = jnp.dot(col_ref[...].reshape(bt * Lc, K * Ci), w_ref[...],
                      preferred_element_type=f32)           # (bt*Lc, Co)
        # MaxPool1d(2) BEFORE bias + ReLU (valid: per-channel bias, ReLU monotone),
        # halving the VPU work.  Pairs never cross batch boundaries (Lc even).
        pr = acc.reshape(bt * (Lc // 2), 2, Co)
        p = jnp.maximum(pr[:, 0, :], pr[:, 1, :])           # (bt*Lc/2, Co)
        p = jnp.maximum(p + b_ref[...], 0.0)                # bias + ReLU (VPU)
        return p.reshape(bt, Lc // 2, Co)

    h = conv_relu_pool(x_ref[...].astype(f32), col1_ref, w1_ref, b1_ref)  # (bt, L/2, C1)
    g = conv_relu_pool(h, col2_ref, w2_ref, b2_ref)                       # (bt, L/4, C2)

    # Flatten + Linear(128*(L/4) -> H) as ONE matmul (contraction L4*C2).  fc1 rows
    # were permuted in the wrapper so the length-major in-kernel flatten matches
    # torch's channel-major Flatten.
    bt, L4, C2 = g.shape
    z = jnp.dot(g.reshape(bt, L4 * C2), wf1_ref[...], preferred_element_type=f32)
    z = jnp.maximum(z + bf1_ref[...], 0.0)                  # ReLU
    # Dropout(p=0.5) is identity in eval/inference mode.
    # TODO(synk): training-mode dropout (pltpu.prng_* Bernoulli mask + 2x scale) not implemented.
    out = jnp.dot(z, wf2_ref[...], preferred_element_type=f32) + bf2_ref[...]
    o_ref[...] = out.astype(o_ref.dtype)                    # (bt, 128) lane-dense store


# ---------------------------------------------------------------------------
# Wrapper: layout plumbing + single pallas_call
# ---------------------------------------------------------------------------
def cnn1d_forward(x, params, *, batch_tile=None, vmem_budget_frac=0.6):
    """x: (B, Cin, L) NCL float32 -> (B, num_classes)."""
    B, Cin, L = x.shape
    assert L % 4 == 0, "MaxPool1d(2) x2 requires L divisible by 4"
    C1, _, K = params["w_conv1"].shape
    assert K == 3, "module uses kernel_size=3, padding=1"
    C2 = params["w_conv2"].shape[0]
    L2, L4 = L // 2, L // 4
    H = params["w_fc1"].shape[1]
    C = params["w_fc2"].shape[1]
    Cpad = ((C + 127) // 128) * 128                         # lane-dense classifier width

    # --- one-time layout plumbing (tiny XLA ops on inputs/weights) ------------
    x_cl = jnp.transpose(x, (0, 2, 1))                      # (B, L, Cin) channels-last
    # conv weights: torch (Co, Ci, K) -> im2col layout (K*Ci, Co), row = k*Ci + ci
    w1 = jnp.transpose(params["w_conv1"], (2, 1, 0)).reshape(K * Cin, C1)
    w2 = jnp.transpose(params["w_conv2"], (2, 1, 0)).reshape(K * C1, C2)
    b1 = params["b_conv1"].reshape(1, C1)
    b2 = params["b_conv2"].reshape(1, C2)
    # torch Flatten on NCL is channel-major (c*L4 + l); kernel flattens length-major
    # (l*C2 + c), so permute fc1 rows once: (C2*L4, H) -> (L4*C2, H).
    wf1 = params["w_fc1"].reshape(C2, L4, H).transpose(1, 0, 2).reshape(L4 * C2, H)
    bf1 = params["b_fc1"].reshape(1, H)
    wf2 = jnp.pad(params["w_fc2"], ((0, 0), (0, Cpad - C)))
    bf2 = jnp.pad(params["b_fc2"].reshape(1, C), ((0, 0), (0, Cpad - C)))

    # --- VMEM-capacity-aware batch tile ----------------------------------------
    try:
        vmem_cap = int(pltpu.get_tpu_info().vmem_capacity_bytes)
    except Exception:
        vmem_cap = 64 * 1024 * 1024                         # conservative (v7x per-TC)
    budget = int(vmem_cap * vmem_budget_frac)
    # Weights are VMEM-resident (constant index maps) but double-buffered -> 2x.
    fixed = 8 * (w1.size + b1.size + w2.size + b2.size
                 + wf1.size + bf1.size + wf2.size + bf2.size)
    per_row = 4 * (
        2 * L * Cin                  # input block (x2 pipeline buffers)
        + L * K * Cin                # conv1 im2col scratch
        + L * C1                     # conv1 matmul acc
        + L2 * C1                    # pooled h
        + L2 * K * C1                # conv2 im2col scratch
        + L2 * C2                    # conv2 matmul acc
        + 2 * L4 * C2                # pooled g + flattened view
        + 2 * H                      # fc1 activation
        + 2 * 2 * Cpad)              # fc2 result + output block (x2 buffers)
    bt_cap = max(1, (budget - fixed) // per_row)
    if batch_tile is not None:
        bt_cap = min(bt_cap, batch_tile)
    if B <= bt_cap and B < 16:
        bt = B                                   # one step; block spans the full batch
    else:
        bt = min(bt_cap, (B + 1) // 2)           # >=2 steps -> both v7x TensorCores
        bt = max(8, (bt // 8) * 8)               # sublane-aligned (bt, Cpad) out block
    nb = (B + bt - 1) // bt
    Bp = nb * bt
    if Bp != B:                                  # pad ragged batches; sliced below
        x_cl = jnp.pad(x_cl, ((0, Bp - B), (0, 0), (0, 0)))

    kernel = functools.partial(_cnn1d_fused_kernel, K=K)
    out = pl.pallas_call(
        kernel,
        out_shape=jax.ShapeDtypeStruct((Bp, Cpad), x.dtype),
        grid=(nb,),
        in_specs=[
            pl.BlockSpec((bt, L, Cin), lambda i: (i, 0, 0)),      # input, batch-tiled
            pl.BlockSpec((K * Cin, C1), lambda i: (0, 0)),        # weights: VMEM-resident
            pl.BlockSpec((1, C1), lambda i: (0, 0)),
            pl.BlockSpec((K * C1, C2), lambda i: (0, 0)),
            pl.BlockSpec((1, C2), lambda i: (0, 0)),
            pl.BlockSpec((L4 * C2, H), lambda i: (0, 0)),
            pl.BlockSpec((1, H), lambda i: (0, 0)),
            pl.BlockSpec((H, Cpad), lambda i: (0, 0)),
            pl.BlockSpec((1, Cpad), lambda i: (0, 0)),
        ],
        out_specs=pl.BlockSpec((bt, Cpad), lambda i: (i, 0)),
        scratch_shapes=[
            pltpu.VMEM((bt, L, K * Cin), jnp.float32),            # conv1 im2col buffer
            pltpu.VMEM((bt, L2, K * C1), jnp.float32),            # conv2 im2col buffer
        ],
        compiler_params=pltpu.CompilerParams(
            dimension_semantics=("parallel",),
            vmem_limit_bytes=int(vmem_cap * 0.9),
        ),
    )(x_cl, w1, b1, w2, b2, wf1, bf1, wf2, bf2)
    return out[:B, :C]


# ---------------------------------------------------------------------------
# Pure-JAX reference (PyTorch semantics: NCL, channel-major flatten)
# ---------------------------------------------------------------------------
def _reference_forward(x, params):
    def conv_block(h, w, b):
        y = jax.lax.conv_general_dilated(
            h, w, window_strides=(1,), padding=((1, 1),),
            dimension_numbers=("NCH", "OIH", "NCH"))
        y = jnp.maximum(y + b[None, :, None], 0.0)
        Bh, Ch, Lh = y.shape
        return jnp.max(y.reshape(Bh, Ch, Lh // 2, 2), axis=-1)

    h = conv_block(x, params["w_conv1"], params["b_conv1"])
    h = conv_block(h, params["w_conv2"], params["b_conv2"])
    h = h.reshape(h.shape[0], -1)
    h = jnp.maximum(h @ params["w_fc1"] + params["b_fc1"], 0.0)
    return h @ params["w_fc2"] + params["b_fc2"]


if __name__ == "__main__":
    B, num_features, L, num_classes = 2, 4, 16, 3
    key = jax.random.PRNGKey(0)
    ks = jax.random.split(key, 9)
    params = {
        # Conv weights stored in PyTorch layout (Cout, Cin, K)
        "w_conv1": 0.10 * jax.random.normal(ks[0], (64, num_features, 3), jnp.float32),
        "b_conv1": 0.10 * jax.random.normal(ks[1], (64,), jnp.float32),
        "w_conv2": 0.05 * jax.random.normal(ks[2], (128, 64, 3), jnp.float32),
        "b_conv2": 0.05 * jax.random.normal(ks[3], (128,), jnp.float32),
        # Linear weights stored pre-transposed (in_dim, out_dim) = torch_weight.T
        "w_fc1": 0.05 * jax.random.normal(ks[4], (128 * (L // 4), 128), jnp.float32),
        "b_fc1": 0.05 * jax.random.normal(ks[5], (128,), jnp.float32),
        "w_fc2": 0.05 * jax.random.normal(ks[6], (128, num_classes), jnp.float32),
        "b_fc2": 0.05 * jax.random.normal(ks[7], (num_classes,), jnp.float32),
    }
    x = jax.random.normal(ks[8], (B, num_features, L), jnp.float32)

    out = jax.jit(cnn1d_forward)(x, params)
    out = jax.block_until_ready(out)
    assert out.shape == (B, num_classes), out.shape

    ref = _reference_forward(x, params)
    assert jnp.allclose(out, ref, atol=2e-3, rtol=2e-3), (out, ref)

    print("KERNEL_OK")
</pallas_src>

<mosaic_0001>
module attributes {stable_mosaic.version = 11 : i64} {
  func.func @_cnn1d_fused_kernel(%arg0: i32, %arg1: memref<2x16x4xf32, #tpu.memory_space<vmem>>, %arg2: memref<12x64xf32, #tpu.memory_space<vmem>>, %arg3: memref<1x64xf32, #tpu.memory_space<vmem>>, %arg4: memref<192x128xf32, #tpu.memory_space<vmem>>, %arg5: memref<1x128xf32, #tpu.memory_space<vmem>>, %arg6: memref<512x128xf32, #tpu.memory_space<vmem>>, %arg7: memref<1x128xf32, #tpu.memory_space<vmem>>, %arg8: memref<128x128xf32, #tpu.memory_space<vmem>>, %arg9: memref<1x128xf32, #tpu.memory_space<vmem>>, %arg10: memref<2x128xf32, #tpu.memory_space<vmem>>, %arg11: memref<2x16x12xf32, #tpu.memory_space<vmem>>, %arg12: memref<2x8x192xf32, #tpu.memory_space<vmem>>) attributes {dimension_semantics = [#tpu.dimension_semantics<parallel>], iteration_bounds = array<i64: 1>, scalar_prefetch = 0 : i64, scratch_operands = 2 : i64, tpu.core_type = #tpu.core_type<tc>, window_params = [{transform_indices = @transform_0, window_bounds = array<i64: 2, 16, 4>}, {pipeline_mode = #tpu.pipeline_mode<synchronous>, transform_indices = @transform_1, window_bounds = array<i64: 12, 64>}, {pipeline_mode = #tpu.pipeline_mode<synchronous>, transform_indices = @transform_2, window_bounds = array<i64: 1, 64>}, {pipeline_mode = #tpu.pipeline_mode<synchronous>, transform_indices = @transform_3, window_bounds = array<i64: 192, 128>}, {pipeline_mode = #tpu.pipeline_mode<synchronous>, transform_indices = @transform_4, window_bounds = array<i64: 1, 128>}, {pipeline_mode = #tpu.pipeline_mode<synchronous>, transform_indices = @transform_5, window_bounds = array<i64: 512, 128>}, {pipeline_mode = #tpu.pipeline_mode<synchronous>, transform_indices = @transform_6, window_bounds = array<i64: 1, 128>}, {pipeline_mode = #tpu.pipeline_mode<synchronous>, transform_indices = @transform_7, window_bounds = array<i64: 128, 128>}, {pipeline_mode = #tpu.pipeline_mode<synchronous>, transform_indices = @transform_8, window_bounds = array<i64: 1, 128>}, {transform_indices = @transform_9, window_bounds = array<i64: 2, 128>}]} {
    %c0 = arith.constant 0 : index
    %c0_0 = arith.constant 0 : index
    %c0_1 = arith.constant 0 : index
    %0 = vector.load %arg1[%c0, %c0_0, %c0_1] : memref<2x16x4xf32, #tpu.memory_space<vmem>>, vector<2x16x4xf32>
    %cst = arith.constant 0.000000e+00 : f32
    %1 = vector.broadcast %cst : f32 to vector<2x1x4xf32>
    %c0_2 = arith.constant 0 : index
    %c0_3 = arith.constant 0 : index
    %c0_4 = arith.constant 0 : index
    %2 = vector.load %arg11[%c0_2, %c0_3, %c0_4] : memref<2x16x12xf32, #tpu.memory_space<vmem>>, vector<2x1x4xf32>
    tpu.vector_store %arg11[%c0_2, %c0_3, %c0_4], %1 {strides = array<i32>} : memref<2x16x12xf32, #tpu.memory_space<vmem>>, vector<2x1x4xf32>,
    %3 = vector.extract_strided_slice %0 {offsets = [0, 0, 0], sizes = [2, 15, 4], strides = [1, 1, 1]} : vector<2x16x4xf32> to vector<2x15x4xf32>
    %c0_5 = arith.constant 0 : index
    %c1 = arith.constant 1 : index
    %c0_6 = arith.constant 0 : index
    %4 = vector.load %arg11[%c0_5, %c1, %c0_6] : memref<2x16x12xf32, #tpu.memory_space<vmem>>, vector<2x15x4xf32>
    tpu.vector_store %arg11[%c0_5, %c1, %c0_6], %3 {strides = array<i32>} : memref<2x16x12xf32, #tpu.memory_space<vmem>>, vector<2x15x4xf32>,
    %c0_7 = arith.constant 0 : index
    %c0_8 = arith.constant 0 : index
    %c4 = arith.constant 4 : index
    %5 = vector.load %arg11[%c0_7, %c0_8, %c4] : memref<2x16x12xf32, #tpu.memory_space<vmem>>, vector<2x16x4xf32>
    tpu.vector_store %arg11[%c0_7, %c0_8, %c4], %0 {strides = array<i32>} : memref<2x16x12xf32, #tpu.memory_space<vmem>>, vector<2x16x4xf32>,
    %6 = vector.extract_strided_slice %0 {offsets = [0, 1, 0], sizes = [2, 15, 4], strides = [1, 1, 1]} : vector<2x16x4xf32> to vector<2x15x4xf32>
    %c0_9 = arith.constant 0 : index
    %c0_10 = arith.constant 0 : index
    %c8 = arith.constant 8 : index
    %7 = vector.load %arg11[%c0_9, %c0_10, %c8] : memref<2x16x12xf32, #tpu.memory_space<vmem>>, vector<2x15x4xf32>
    tpu.vector_store %arg11[%c0_9, %c0_10, %c8], %6 {strides = array<i32>} : memref<2x16x12xf32, #tpu.memory_space<vmem>>, vector<2x15x4xf32>,
    %c0_11 = arith.constant 0 : index
    %c15 = arith.constant 15 : index
    %c8_12 = arith.constant 8 : index
    %8 = vector.load %arg11[%c0_11, %c15, %c8_12] : memref<2x16x12xf32, #tpu.memory_space<vmem>>, vector<2x1x4xf32>
    tpu.vector_store %arg11[%c0_11, %c15, %c8_12], %1 {strides = array<i32>} : memref<2x16x12xf32, #tpu.memory_space<vmem>>, vector<2x1x4xf32>,
    %c0_13 = arith.constant 0 : index
    %c0_14 = arith.constant 0 : index
    %c0_15 = arith.constant 0 : index
    %9 = vector.load %arg11[%c0_13, %c0_14, %c0_15] : memref<2x16x12xf32, #tpu.memory_space<vmem>>, vector<2x16x12xf32>
    %10 = vector.shape_cast %9 : vector<2x16x12xf32> to vector<32x12xf32>
    %c0_16 = arith.constant 0 : index
    %c0_17 = arith.constant 0 : index
    %11 = vector.load %arg2[%c0_16, %c0_17] : memref<12x64xf32, #tpu.memory_space<vmem>>, vector<12x64xf32>
    %cst_18 = arith.constant dense<0.000000e+00> : vector<32x64xf32>
    %12 = tpu.matmul %10, %11, %cst_18 {dimension_numbers = #tpu.dot_dimension_numbers<[1], [0], [0], [1], [0, 0, 1, 1], [], []>} : vector<32x12xf32>, vector<12x64xf32>, vector<32x64xf32> -> vector<32x64xf32>
    %13 = vector.shape_cast %12 : vector<32x64xf32> to vector<16x2x64xf32>
    %14 = vector.extract_strided_slice %13 {offsets = [0, 0, 0], sizes = [16, 1, 64], strides = [1, 1, 1]} : vector<16x2x64xf32> to vector<16x1x64xf32>
    %15 = vector.shape_cast %14 : vector<16x1x64xf32> to vector<16x64xf32>
    %16 = vector.extract_strided_slice %13 {offsets = [0, 1, 0], sizes = [16, 1, 64], strides = [1, 1, 1]} : vector<16x2x64xf32> to vector<16x1x64xf32>
    %17 = vector.shape_cast %16 : vector<16x1x64xf32> to vector<16x64xf32>
    %18 = arith.maximumf %15, %17 : vector<16x64xf32>
    %c0_19 = arith.constant 0 : index
    %c0_20 = arith.constant 0 : index
    %19 = vector.load %arg3[%c0_19, %c0_20] : memref<1x64xf32, #tpu.memory_space<vmem>>, vector<1x64xf32>
    %20 = vector.broadcast %19 : vector<1x64xf32> to vector<16x64xf32>
    %21 = arith.addf %18, %20 : vector<16x64xf32>
    %cst_21 = arith.constant 0.000000e+00 : f32
    %22 = vector.broadcast %cst_21 : f32 to vector<16x64xf32>
    %23 = arith.maximumf %21, %22 : vector<16x64xf32>
    %24 = vector.shape_cast %23 : vector<16x64xf32> to vector<2x8x64xf32>
    %cst_22 = arith.constant 0.000000e+00 : f32
    %25 = vector.broadcast %cst_22 : f32 to vector<2x1x64xf32>
    %c0_23 = arith.constant 0 : index
    %c0_24 = arith.constant 0 : index
    %c0_25 = arith.constant 0 : index
    %26 = vector.load %arg12[%c0_23, %c0_24, %c0_25] : memref<2x8x192xf32, #tpu.memory_space<vmem>>, vector<2x1x64xf32>
    tpu.vector_store %arg12[%c0_23, %c0_24, %c0_25], %25 {strides = array<i32>} : memref<2x8x192xf32, #tpu.memory_space<vmem>>, vector<2x1x64xf32>,
    %27 = vector.extract_strided_slice %24 {offsets = [0, 0, 0], sizes = [2, 7, 64], strides = [1, 1, 1]} : vector<2x8x64xf32> to vector<2x7x64xf32>
    %c0_26 = arith.constant 0 : index
    %c1_27 = arith.constant 1 : index
    %c0_28 = arith.constant 0 : index
    %28 = vector.load %arg12[%c0_26, %c1_27, %c0_28] : memref<2x8x192xf32, #tpu.memory_space<vmem>>, vector<2x7x64xf32>
    tpu.vector_store %arg12[%c0_26, %c1_27, %c0_28], %27 {strides = array<i32>} : memref<2x8x192xf32, #tpu.memory_space<vmem>>, vector<2x7x64xf32>,
    %c0_29 = arith.constant 0 : index
    %c0_30 = arith.constant 0 : index
    %c64 = arith.constant 64 : index
    %29 = vector.load %arg12[%c0_29, %c0_30, %c64] : memref<2x8x192xf32, #tpu.memory_space<vmem>>, vector<2x8x64xf32>
    tpu.vector_store %arg12[%c0_29, %c0_30, %c64], %24 {strides = array<i32>} : memref<2x8x192xf32, #tpu.memory_space<vmem>>, vector<2x8x64xf32>,
    %30 = vector.extract_strided_slice %24 {offsets = [0, 1, 0], sizes = [2, 7, 64], strides = [1, 1, 1]} : vector<2x8x64xf32> to vector<2x7x64xf32>
    %c0_31 = arith.constant 0 : index
    %c0_32 = arith.constant 0 : index
    %c128 = arith.constant 128 : index
    %31 = vector.load %arg12[%c0_31, %c0_32, %c128] : memref<2x8x192xf32, #tpu.memory_space<vmem>>, vector<2x7x64xf32>
    tpu.vector_store %arg12[%c0_31, %c0_32, %c128], %30 {strides = array<i32>} : memref<2x8x192xf32, #tpu.memory_space<vmem>>, vector<2x7x64xf32>,
    %c0_33 = arith.constant 0 : index
    %c7 = arith.constant 7 : index
    %c128_34 = arith.constant 128 : index
    %32 = vector.load %arg12[%c0_33, %c7, %c128_34] : memref<2x8x192xf32, #tpu.memory_space<vmem>>, vector<2x1x64xf32>
    tpu.vector_store %arg12[%c0_33, %c7, %c128_34], %25 {strides = array<i32>} : memref<2x8x192xf32, #tpu.memory_space<vmem>>, vector<2x1x64xf32>,
    %c0_35 = arith.constant 0 : index
    %c0_36 = arith.constant 0 : index
    %c0_37 = arith.constant 0 : index
    %33 = vector.load %arg12[%c0_35, %c0_36, %c0_37] : memref<2x8x192xf32, #tpu.memory_space<vmem>>, vector<2x8x192xf32>
    %34 = vector.shape_cast %33 : vector<2x8x192xf32> to vector<16x192xf32>
    %c0_38 = arith.constant 0 : index
    %c0_39 = arith.constant 0 : index
    %35 = vector.load %arg4[%c0_38, %c0_39] : memref<192x128xf32, #tpu.memory_space<vmem>>, vector<192x128xf32>
    %cst_40 = arith.constant dense<0.000000e+00> : vector<16x128xf32>
    %36 = tpu.matmul %34, %35, %cst_40 {dimension_numbers = #tpu.dot_dimension_numbers<[1], [0], [0], [1], [0, 0, 1, 1], [], []>} : vector<16x192xf32>, vector<192x128xf32>, vector<16x128xf32> -> vector<16x128xf32>
    %37 = vector.shape_cast %36 : vector<16x128xf32> to vector<8x2x128xf32>
    %38 = vector.extract_strided_slice %37 {offsets = [0, 0, 0], sizes = [8, 1, 128], strides = [1, 1, 1]} : vector<8x2x128xf32> to vector<8x1x128xf32>
    %39 = vector.shape_cast %38 : vector<8x1x128xf32> to vector<8x128xf32>
    %40 = vector.extract_strided_slice %37 {offsets = [0, 1, 0], sizes = [8, 1, 128], strides = [1, 1, 1]} : vector<8x2x128xf32> to vector<8x1x128xf32>
    %41 = vector.shape_cast %40 : vector<8x1x128xf32> to vector<8x128xf32>
    %42 = arith.maximumf %39, %41 : vector<8x128xf32>
    %c0_41 = arith.constant 0 : index
    %c0_42 = arith.constant 0 : index
    %43 = vector.load %arg5[%c0_41, %c0_42] : memref<1x128xf32, #tpu.memory_space<vmem>>, vector<1x128xf32>
    %44 = vector.broadcast %43 : vector<1x128xf32> to vector<8x128xf32>
    %45 = arith.addf %42, %44 : vector<8x128xf32>
    %cst_43 = arith.constant 0.000000e+00 : f32
    %46 = vector.broadcast %cst_43 : f32 to vector<8x128xf32>
    %47 = arith.maximumf %45, %46 : vector<8x128xf32>
    %48 = vector.shape_cast %47 : vector<8x128xf32> to vector<2x4x128xf32>
    %49 = vector.shape_cast %48 : vector<2x4x128xf32> to vector<2x512xf32>
    %c0_44 = arith.constant 0 : index
    %c0_45 = arith.constant 0 : index
    %50 = vector.load %arg6[%c0_44, %c0_45] : memref<512x128xf32, #tpu.memory_space<vmem>>, vector<512x128xf32>
    %cst_46 = arith.constant dense<0.000000e+00> : vector<2x128xf32>
    %51 = tpu.matmul %49, %50, %cst_46 {dimension_numbers = #tpu.dot_dimension_numbers<[1], [0], [0], [1], [0, 0, 1, 1], [], []>} : vector<2x512xf32>, vector<512x128xf32>, vector<2x128xf32> -> vector<2x128xf32>
    %c0_47 = arith.constant 0 : index
    %c0_48 = arith.constant 0 : index
    %52 = vector.load %arg7[%c0_47, %c0_48] : memref<1x128xf32, #tpu.memory_space<vmem>>, vector<1x128xf32>
    %53 = vector.broadcast %52 : vector<1x128xf32> to vector<2x128xf32>
    %54 = arith.addf %51, %53 : vector<2x128xf32>
    %cst_49 = arith.constant 0.000000e+00 : f32
    %55 = vector.broadcast %cst_49 : f32 to vector<2x128xf32>
    %56 = arith.maximumf %54, %55 : vector<2x128xf32>
    %c0_50 = arith.constant 0 : index
    %c0_51 = arith.constant 0 : index
    %57 = vector.load %arg8[%c0_50, %c0_51] : memref<128x128xf32, #tpu.memory_space<vmem>>, vector<128x128xf32>
    %cst_52 = arith.constant dense<0.000000e+00> : vector<2x128xf32>
    %58 = tpu.matmul %56, %57, %cst_52 {dimension_numbers = #tpu.dot_dimension_numbers<[1], [0], [0], [1], [0, 0, 1, 1], [], []>} : vector<2x128xf32>, vector<128x128xf32>, vector<2x128xf32> -> vector<2x128xf32>
    %c0_53 = arith.constant 0 : index
    %c0_54 = arith.constant 0 : index
    %59 = vector.load %arg9[%c0_53, %c0_54] : memref<1x128xf32, #tpu.memory_space<vmem>>, vector<1x128xf32>
    %60 = vector.broadcast %59 : vector<1x128xf32> to vector<2x128xf32>
    %61 = arith.addf %58, %60 : vector<2x128xf32>
    %c0_55 = arith.constant 0 : index
    %c0_56 = arith.constant 0 : index
    %62 = vector.load %arg10[%c0_55, %c0_56] : memref<2x128xf32, #tpu.memory_space<vmem>>, vector<2x128xf32>
    tpu.vector_store %arg10[%c0_55, %c0_56], %61 {strides = array<i32>} : memref<2x128xf32, #tpu.memory_space<vmem>>, vector<2x128xf32>,
    return
  }
  func.func @transform_0(%arg0: i32) -> (i32, i32, i32) {
    %c0_i32 = arith.constant 0 : i32
    %c0_i32_0 = arith.constant 0 : i32
    %c0_i32_1 = arith.constant 0 : i32
    return %arg0, %c0_i32, %c0_i32_0 : i32, i32, i32
  }
  func.func @transform_1(%arg0: i32) -> (i32, i32) {
    %c0_i32 = arith.constant 0 : i32
    %c0_i32_0 = arith.constant 0 : i32
    %c0_i32_1 = arith.constant 0 : i32
    return %c0_i32, %c0_i32_0 : i32, i32
  }
  func.func @transform_2(%arg0: i32) -> (i32, i32) {
    %c0_i32 = arith.constant 0 : i32
    %c0_i32_0 = arith.constant 0 : i32
    %c0_i32_1 = arith.constant 0 : i32
    return %c0_i32, %c0_i32_0 : i32, i32
  }
  func.func @transform_3(%arg0: i32) -> (i32, i32) {
    %c0_i32 = arith.constant 0 : i32
    %c0_i32_0 = arith.constant 0 : i32
    %c0_i32_1 = arith.constant 0 : i32
    return %c0_i32, %c0_i32_0 : i32, i32
  }
  func.func @transform_4(%arg0: i32) -> (i32, i32) {
    %c0_i32 = arith.constant 0 : i32
    %c0_i32_0 = arith.constant 0 : i32
    %c0_i32_1 = arith.constant 0 : i32
    return %c0_i32, %c0_i32_0 : i32, i32
  }
  func.func @transform_5(%arg0: i32) -> (i32, i32) {
    %c0_i32 = arith.constant 0 : i32
    %c0_i32_0 = arith.constant 0 : i32
    %c0_i32_1 = arith.constant 0 : i32
    return %c0_i32, %c0_i32_0 : i32, i32
  }
  func.func @transform_6(%arg0: i32) -> (i32, i32) {
    %c0_i32 = arith.constant 0 : i32
    %c0_i32_0 = arith.constant 0 : i32
    %c0_i32_1 = arith.constant 0 : i32
    return %c0_i32, %c0_i32_0 : i32, i32
  }
  func.func @transform_7(%arg0: i32) -> (i32, i32) {
    %c0_i32 = arith.constant 0 : i32
    %c0_i32_0 = arith.constant 0 : i32
    %c0_i32_1 = arith.constant 0 : i32
    return %c0_i32, %c0_i32_0 : i32, i32
  }
  func.func @transform_8(%arg0: i32) -> (i32, i32) {
    %c0_i32 = arith.constant 0 : i32
    %c0_i32_0 = arith.constant 0 : i32
    %c0_i32_1 = arith.constant 0 : i32
    return %c0_i32, %c0_i32_0 : i32, i32
  }
  func.func @transform_9(%arg0: i32) -> (i32, i32) {
    %c0_i32 = arith.constant 0 : i32
    %c0_i32_0 = arith.constant 0 : i32
    return %arg0, %c0_i32 : i32, i32
  }
}

</mosaic_0001>

<bundles_post_ra>
// kernel: cnn1d_forward.1
= control target key start
LH: loop header
LB: loop body
LE: loop exit
PB: predicated region body
PF: predicated region fallthrough
CT: control target
= control target key end

     0   :  { %vm40_vm0 = vcmask 31744   ;;  %vm42_vm1 = vcmask 30720   ;;  %s1535_s13 = smov 8   ;;  %s1536_s14 = smov 4   ;;  %vm37_vm2 = vcmask 24576   ;;  %v1537_v4 = vmov 0.0   ;;  %s2152_s0 = inlined_call_operand.vmem [shape: f32[2,16,4], index: 0, kind: input, shape index: {}]   ;;  %s2153_s1 = inlined_call_operand.vmem [shape: f32[12,64], index: 1, kind: input, shape index: {}]   ;;  %s2154_s2 = inlined_call_operand.vmem [shape: f32[1,64], index: 2, kind: input, shape index: {}]   ;;  %s2155_s3 = inlined_call_operand.vmem [shape: f32[192,128], index: 3, kind: input, shape index: {}]   ;;  %s2156_s4 = inlined_call_operand.vmem [shape: f32[1,128], index: 4, kind: input, shape index: {}]   ;;  %s2157_s5 = inlined_call_operand.vmem [shape: f32[512,128], index: 5, kind: input, shape index: {}]   ;;  %s2158_s6 = inlined_call_operand.vmem [shape: f32[1,128], index: 6, kind: input, shape index: {}]   ;;  %s2159_s7 = inlined_call_operand.vmem [shape: f32[128,128], index: 7, kind: input, shape index: {}]   ;;  %s2160_s8 = inlined_call_operand.vmem [shape: f32[1,128], index: 8, kind: input, shape index: {}]   ;;  %s2161_s9 = inlined_call_operand.hbm [shape: f32[2,128], index: 9, kind: output, shape index: {}]  }
   0x1   :  { %v33_v0 = vld [vmem:[%s2152_s0] sm:$0xff]  ;;  %v34_v1 = vld [vmem:[%s2152_s0 + $0x8] sm:$0xff]  ;;  %v36_v2 = vld [vmem:[%s2152_s0 + $0x18] sm:$0xff]  ;;  %38 = vst.msk [vmem:[#allocation2] sm:$0x1] %vm37_vm2, %v1537_v4  ;;  %vm107_vm3 = vcmask 1043456  }
   0x2   :  { %67 = vrot.lane.b32.xlu1 %v33_v0, %s1535_s13  ;;  %41 = vst.msk [vmem:[#allocation2 + $0x1] sm:$0xff] %vm40_vm0, %v33_v0  ;;  %50 = vrot.lane.b32.xlu0 %v33_v0, %s1536_s14  ;;  %v35_v3 = vld [vmem:[%s2152_s0 + $0x10] sm:$0xff]  ;;  %v92_v5 = vld [vmem:[%s2153_s1] sm:$0xff]  ;;  %vm1538_vm4 = vmmov 1  }
   0x3   :  { %43 = vst.msk [vmem:[#allocation2 + $0x9] sm:$0x7f] %vm42_vm1, %v34_v1  ;;  %45 = vst.msk [vmem:[#allocation2 + $0x19] sm:$0x7f] %vm42_vm1, %v36_v2  ;;  %v93_v6 = vld [vmem:[%s2153_s1 + $0x8] sm:$0xf] }
   0x4   :  { %44 = vst.msk [vmem:[#allocation2 + $0x11] sm:$0xff] %vm40_vm0, %v35_v3  ;;  %v1371_v7 = vpack.c.bf16 %v93_v6, %v92_v5  ;;  %vm1372_vm5 = vmpackc.low %vm107_vm3, %vm1538_vm4 }
   0x5   :  { %39 = vst.msk [vmem:[#allocation2 + $0x10] sm:$0x1] %vm37_vm2, %v1537_v4 }
   0x6   :  { %14 = vsyncpa [#allocation5], 0  ;;  %69 = vrot.lane.b32.xlu1 %v34_v1, %s1535_s13  ;;  %52 = vrot.lane.b32.xlu0 %v34_v1, %s1536_s14  ;;  %vm62_vm6 = vcmask 64544   ;;  %vm79_vm7 = vcmask 97345   ;;  %vm81_vm8 = vcmask 97344   ;;  %vm85_vm9 = vcmask 90176  }
   0x7   :  { %1373 = vmatprep.subr.msk.bf16.mxu0 %vm1372_vm5, %v1371_v7  ;;  %vm94_vm10 = vcmask 97280   ;;  %vm415_vm11 = vcmask 516096   ;;  %v568_v20 = vld [vmem:[%s2155_s3] sm:$0xff]  ;;  %v569_v21 = vld [vmem:[%s2155_s3 + $0x8] sm:$0xff]  ;;  %v570_v22 = vld [vmem:[%s2155_s3 + $0x10] sm:$0xff]  ;;  %v1539_v23 = vmov 0.0|0.0   ;;  %v204_v53 = vlaneseq }
   0x8   :  { %1376 = vmatpush3.bf16.msk.msra.mxu0 %vm1372_vm5, %v1371_v7  ;;  %562 = vst.msk [vmem:[#allocation3 + $0xf] sm:$0x1] %vm415_vm11, %v1537_v4  ;;  %416 = vst.msk [vmem:[#allocation3] sm:$0x1] %vm415_vm11, %v1537_v4  ;;  %1377 = vmatprep.subr.bf16.mxu1 %v1539_v23  ;;  %v1378_v24 = vpack.c.bf16 %v569_v21, %v568_v20  ;;  %v571_v25 = vld [vmem:[%s2155_s3 + $0x18] sm:$0xff]  ;;  %v572_v27 = vld [vmem:[%s2155_s3 + $0x20] sm:$0xff] }
   0x9   :  { %417 = vst.msk [vmem:[#allocation3 + $0x10] sm:$0x1] %vm415_vm11, %v1537_v4  ;;  %563 = vst.msk [vmem:[#allocation3 + $0x1f] sm:$0x1] %vm415_vm11, %v1537_v4  ;;  %v1381_v26 = vpack.c.bf16 %v571_v25, %v570_v22  ;;  %v573_v28 = vld [vmem:[%s2155_s3 + $0x28] sm:$0xff]  ;;  %v574_v30 = vld [vmem:[%s2155_s3 + $0x30] sm:$0xff] }
   0xa   :  { %56 = vrot.lane.b32.xlu1 %v36_v2, %s1536_s14  ;;  %54 = vrot.lane.b32.xlu0 %v35_v3, %s1536_s14  ;;  %v1384_v29 = vpack.c.bf16 %v573_v28, %v572_v27  ;;  %v575_v31 = vld [vmem:[%s2155_s3 + $0x38] sm:$0xff]  ;;  %v576_v33 = vld [vmem:[%s2155_s3 + $0x40] sm:$0xff]  ;;  %v1540_v51 = vmov 1983009808   ;;  %v1698_v55 = vshrl.u32 %v204_v53, 7  ;;  %vm488_vm12 = vcmask 1042434  }
   0xb   :  { %1379 = vmatpush1.bf16.msra.mxu1 %v1378_v24  ;;  %v1387_v32 = vpack.c.bf16 %v575_v31, %v574_v30  ;;  %v577_v34 = vld [vmem:[%s2155_s3 + $0x48] sm:$0xff]  ;;  %v578_v36 = vld [vmem:[%s2155_s3 + $0x50] sm:$0xff]  ;;  %v579_v37 = vld [vmem:[%s2155_s3 + $0x58] sm:$0xff]  ;;  %v202_v52 = vunpack.c.l.s4 %v1540_v51  ;;  %vm521_vm13 = vcmask 1041409   ;;  %vm490_vm14 = vcmask 1043459   ;;  %s1541_s22 = smov 64  }
   0xc   :  { %1380 = vmatprep.subr.bf16.mxu1 %v1539_v23  ;;  %v1390_v35 = vpack.c.bf16 %v577_v34, %v576_v33  ;;  %v1393_v38 = vpack.c.bf16 %v579_v37, %v578_v36  ;;  %v580_v39 = vld [vmem:[%s2155_s3 + $0x60] sm:$0xff]  ;;  %v581_v40 = vld [vmem:[%s2155_s3 + $0x68] sm:$0xff]  ;;  %v582_v42 = vld [vmem:[%s2155_s3 + $0x70] sm:$0xff]  ;;  %v1723_v5 = vsub.s32 0, %v1698_v55  ;;  %vm492_vm15 = vcmask 1044484   ;;  %s1544_s12 = smov [#allocation4]  }
   0xd   :  { %v1396_v41 = vpack.c.bf16 %v581_v40, %v580_v39  ;;  %v583_v43 = vld [vmem:[%s2155_s3 + $0x78] sm:$0xff]  ;;  %v584_v45 = vld [vmem:[%s2155_s3 + $0x80] sm:$0xff]  ;;  %v585_v46 = vld [vmem:[%s2155_s3 + $0x88] sm:$0xff]  ;;  %v203_v54 = vunpack.c.0.s8 %v202_v52  ;;  %vm494_vm0 = vcmask 1045509   ;;  %vm496_vm1 = vcmask 1046534  }
   0xe   :  { %73 = vrot.lane.b32.xlu1 %v36_v2, %s1535_s13  ;;  %71 = vrot.lane.b32.xlu0 %v35_v3, %s1535_s13  ;;  %v1399_v44 = vpack.c.bf16 %v583_v43, %v582_v42  ;;  %v1402_v47 = vpack.c.bf16 %v585_v46, %v584_v45  ;;  %v586_v48 = vld [vmem:[%s2155_s3 + $0x90] sm:$0xff]  ;;  %v587_v49 = vld [vmem:[%s2155_s3 + $0x98] sm:$0xff]  ;;  %vm498_vm2 = vcmask 1047559   ;;  %vm559_vm3 = vcmask 522240   ;;  %s1190_s13 = sshll.u32 %s1544_s12, 4  ;;  %s1191_s13 = int_to_ptr.vmem [resolvable:$true] %s1190_s13 }
   0xf   :  { %1382 = vmatpush1.bf16.msra.mxu1 %v1381_v26  ;;  %v1405_v50 = vpack.c.bf16 %v587_v49, %v586_v48  ;;  %v1219_v56 = vld [vmem:[%s2154_s2] ss:$0 sm:$0xff]  ;;  %v1704_v58 = vsub.s32 %v203_v54, %v1698_v55  ;;  %vm508_vm4 = vcmask 523265   ;;  %vm592_vm5 = vcmask 523264   ;;  %s1511_s14 = scalar_lea.vmem %s1191_s13, 32  ;;  %p1516_p1 = scmp.lt.s32.totalorder %s1191_s13, %s1191_s13 }
  0x10   :  { %1383 = vmatprep.subr.bf16.mxu1 %v1539_v23  ;;  %v354_v57 = vcombine.high %v1219_v56, %v1219_v56  ;;  %p1512_p0 = scmp.ne.s32.totalorder %s1191_s13, %s1511_s14  ;;  %p1517_p2 = scmp.lt.s32.totalorder %s1511_s14, %s1511_s14 }
  0x11   :  { %v1707_v59 = vrot.slane %v1219_v56, %v1704_v58 }
  0x12   :  { %v1710_v60 = vrot.slane %v354_v57, %v1704_v58  ;;  %p1518_p3 = por %p1517_p2, %p1516_p1 }
  0x13   :  { %1385 = vmatpush1.bf16.msra.mxu1 %v1384_v29  ;;  %v1714_v61 = vcombine.high %v1707_v59, %v1707_v59 }
  0x14   :  { %1386 = vmatprep.subr.bf16.mxu1 %v1539_v23  ;;  %v1718_v63 = vcombine.high %v1710_v60, %v1710_v60  ;;  %v373_v2 = vrot.slane %v1710_v60, 1  ;;  %p1519_p4 = pnand %p1518_p3, %p1512_p0 }
  0x17   :  { %1388 = vmatpush1.bf16.msra.mxu1 %v1387_v32 }
  0x18   :  { %1389 = vmatprep.subr.bf16.mxu1 %v1539_v23 }
  0x1b   :  { %1391 = vmatpush1.bf16.msra.mxu1 %v1390_v35 }
  0x1c   :  { %1392 = vmatprep.subr.bf16.mxu1 %v1539_v23 }
  0x1f   :  { %1394 = vmatpush1.bf16.msra.mxu1 %v1393_v38 }
  0x20   :  { %1395 = vmatprep.subr.bf16.mxu1 %v1539_v23 }
  0x23   :  { %1397 = vmatpush1.bf16.msra.mxu1 %v1396_v41 }
  0x24   :  { %1398 = vmatprep.subr.bf16.mxu1 %v1539_v23 }
  0x27   :  { %1400 = vmatpush1.bf16.msra.mxu1 %v1399_v44 }
  0x28   :  { %1401 = vmatprep.subr.bf16.mxu1 %v1539_v23 }
  0x2b   :  { %1403 = vmatpush1.bf16.msra.mxu1 %v1402_v47 }
  0x2c   :  { %1404 = vmatprep.subr.bf16.mxu1 %v1539_v23 }
  0x2f   :  { %1406 = vmatpush1.bf16.msra.mxu1 %v1405_v50 }
  0x30   :  { %1407 = vmatprep.subr.bf16.mxu1 %v1539_v23 }
  0x74   :  { %v68_v8 = vpop.permute.xlu1 %67  ;;  %v51_v9 = vpop.permute.xlu0 %50 }
  0x75   :  { %63 = vst.msk [vmem:[#allocation2] sm:$0xff] %vm62_vm6, %v51_v9 }
  0x76   :  { %80 = vst.msk [vmem:[#allocation2 - $0x1] sm:$0xfe] %vm79_vm7, %v68_v8  ;;  %v371_v8 = vrot.slane %v1707_v59, 1 }
  0x78   :  { %v70_v10 = vpop.permute.xlu1 %69  ;;  %v53_v11 = vpop.permute.xlu0 %52 }
  0x79   :  { %64 = vst.msk [vmem:[#allocation2 + $0x8] sm:$0xff] %vm62_vm6, %v53_v11 }
  0x7a   :  { %82 = vst.msk [vmem:[#allocation2 + $0x7] sm:$0xff] %vm81_vm8, %v70_v10 }
  0x7b   :  { %86 = vst.msk [vmem:[#allocation2 + $0xf] sm:$0x1] %vm85_vm9, %v1537_v4 }
  0x7c   :  { %v57_v12 = vpop.permute.xlu1 %56  ;;  %v55_v13 = vpop.permute.xlu0 %54 }
  0x7d   :  { %66 = vst.msk [vmem:[#allocation2 + $0x18] sm:$0xff] %vm62_vm6, %v57_v12  ;;  %65 = vst.msk [vmem:[#allocation2 + $0x10] sm:$0xff] %vm62_vm6, %v55_v13  ;;  %v372_v12 = vrot.slane %v1714_v61, 1  ;;  %vm542_vm6 = vcmask 1048064  }
  0x7e   :  { %87 = vst.msk [vmem:[#allocation2 + $0x1f] sm:$0x1] %vm85_vm9, %v1537_v4 }
  0x80   :  { %v74_v14 = vpop.permute.xlu1 %73  ;;  %v72_v15 = vpop.permute.xlu0 %71 }
  0x81   :  { %84 = vst.msk [vmem:[#allocation2 + $0x17] sm:$0xff] %vm81_vm8, %v74_v14  ;;  %v88_v16 = vld [vmem:[#allocation2] sm:$0xff] }
  0x82   :  { %83 = vst.msk [vmem:[#allocation2 + $0xf] sm:$0xfe] %vm79_vm7, %v72_v15  ;;  %v89_v17 = vld [vmem:[#allocation2 + $0x8] sm:$0xff]  ;;  %1330 = vmatprep.mubr.msk.f32.mxu0 %vm94_vm10, %v88_v16  ;;  %v374_v16 = vrot.slane %v1718_v63, 1  ;;  %vm1543_vm7 = vmmov 0  }
  0x83   :  { %1331 = vmatmul.mubr.msk.f32.vlgmr.msra.gmra.mrb[0].mxu0 %vm94_vm10, %v89_v17 }
  0x88   :  { %v91_v19 = vld [vmem:[#allocation2 + $0x18] sm:$0xff] }
  0x89   :  { %v90_v18 = vld [vmem:[#allocation2 + $0x10] sm:$0xff] }
  0x8a   :  { %1333 = vmatprep.mubr.msk.f32.mxu0 %vm94_vm10, %v90_v18 }
  0x8b   :  { %1334 = vmatmul.mubr.msk.f32.gmra.mrb[2].mxu0 %vm94_vm10, %v91_v19 }
 0x156   :  { %v1332_v62 = vpop.f32.mrb[0].mxu0 }
 0x157   :  { %v217_v0 = vcombine.high %v1332_v62, %v1332_v62  ;;  %v224_v1 = vrot.slane %v1332_v62, %v1704_v58  ;;  %v177_v3 = vpop.f32.mrb[1].mxu0 }
 0x158   :  { %v200_v6 = vcombine.high %v177_v3, %v177_v3  ;;  %v207_v7 = vrot.slane %v177_v3, %v1704_v58 }
 0x159   :  { %v231_v9 = vrot.slane %v217_v0, %v1704_v58  ;;  %v232_v10 = vcombine.high %v224_v1, %v224_v1  ;;  %v1207_v11 = vrot.slane %v224_v1, 9 }
 0x15a   :  { %v214_v13 = vrot.slane %v200_v6, %v1704_v58  ;;  %v215_v14 = vcombine.high %v207_v7, %v207_v7  ;;  %v1203_v15 = vrot.slane %v207_v7, 9 }
 0x15b   :  { %v233_v17 = vcombine.high %v231_v9, %v231_v9  ;;  %v1208_v18 = vrot.slane %v232_v10, 9  ;;  %v1209_v19 = vrot.slane %v231_v9, 9  ;;  %v336_v20 = vmax.f32 %v224_v1, %v1207_v11 }
 0x15c   :  { %v216_v21 = vcombine.high %v214_v13, %v214_v13  ;;  %v1204_v22 = vrot.slane %v215_v14, 9  ;;  %v1205_v24 = vrot.slane %v214_v13, 9  ;;  %v332_v25 = vmax.f32 %v207_v7, %v1203_v15 }
 0x15d   :  { %v1210_v26 = vrot.slane %v233_v17, 9  ;;  %v337_v27 = vmax.f32 %v232_v10, %v1208_v18  ;;  %v338_v28 = vmax.f32 %v231_v9, %v1209_v19  ;;  %v387_v29 = vadd.f32 %v1710_v60, %v336_v20 }
 0x15e   :  { %v1335_v30 = vpop.f32.mrb[2].mxu0  ;;  %v1206_v31 = vrot.slane %v216_v21, 9  ;;  %v333_v32 = vmax.f32 %v215_v14, %v1204_v22  ;;  %v334_v33 = vmax.f32 %v214_v13, %v1205_v24  ;;  %v383_v34 = vadd.f32 %v1707_v59, %v332_v25 }
 0x15f   :  { %v187_v35 = vpop.f32.mrb[3].mxu0  ;;  %v339_v36 = vmax.f32 %v233_v17, %v1210_v26  ;;  %v1735_v37 = vadd.f32 %v373_v2, %v337_v27  ;;  %v1738_v38 = vadd.f32 %v1718_v63, %v338_v28  ;;  %v403_v39 = vmax.f32 %v387_v29, 0.0 }
 0x160   :  { %v335_v40 = vmax.f32 %v216_v21, %v1206_v31  ;;  %v384_v41 = vadd.f32 %v371_v8, %v333_v32  ;;  %v385_v42 = vadd.f32 %v1714_v61, %v334_v33  ;;  %v399_v43 = vmax.f32 %v383_v34, 0.0 }
 0x161   :  { %v404_v44 = vmax.f32 %v1735_v37, 0.0  ;;  %v1745_v45 = vrot.slane %v403_v39, %v1723_v5  ;;  %v251_v46 = vcombine.high %v1335_v30, %v1335_v30  ;;  %v258_v47 = vrot.slane %v1335_v30, %v1704_v58 }
 0x162   :  { %v386_v48 = vadd.f32 %v372_v12, %v335_v40  ;;  %v400_v49 = vmax.f32 %v384_v41, 0.0  ;;  %v401_v50 = vmax.f32 %v385_v42, 0.0  ;;  %v435_v51 = vrot.slane %v399_v43, %v1723_v5 }
 0x163   :  { %v265_v52 = vrot.slane %v251_v46, %v1704_v58  ;;  %v266_v53 = vcombine.high %v258_v47, %v258_v47  ;;  %v1215_v54 = vrot.slane %v258_v47, 9  ;;  %v234_v56 = vcombine.high %v187_v35, %v187_v35 }
 0x164   :  { %v402_v57 = vmax.f32 %v386_v48, 0.0  ;;  %v439_v62 = vrot.slane %v400_v49, %v1723_v5  ;;  %v443_v0 = vrot.slane %v401_v50, %v1723_v5  ;;  %v241_v1 = vrot.slane %v187_v35, %v1704_v58 }
 0x165   :  { %v267_v3 = vcombine.high %v265_v52, %v265_v52  ;;  %v1216_v6 = vrot.slane %v266_v53, 9  ;;  %v1217_v7 = vrot.slane %v265_v52, 9  ;;  %v344_v9 = vmax.f32 %v258_v47, %v1215_v54 }
 0x166   :  { %v1756_v10 = vrot.slane %v402_v57, %v1723_v5  ;;  %v489_v11 = vsel %vm488_vm12, %v439_v62, %v435_v51  ;;  %v545_v13 = vsel %vm521_vm13, %v443_v0, %v439_v62  ;;  %v248_v14 = vrot.slane %v234_v56, %v1704_v58 }
 0x167   :  { %v1762_v15 = vsel %vm490_vm14, %v443_v0, %v489_v11  ;;  %v1218_v17 = vrot.slane %v267_v3, 9  ;;  %v345_v18 = vmax.f32 %v266_v53, %v1216_v6  ;;  %v346_v19 = vmax.f32 %v265_v52, %v1217_v7 }
 0x168   :  { %v546_v20 = vsel %vm488_vm12, %v1756_v10, %v545_v13  ;;  %v395_v21 = vadd.f32 %v1710_v60, %v344_v9  ;;  %v249_v22 = vcombine.high %v241_v1, %v241_v1  ;;  %v250_v24 = vcombine.high %v248_v14, %v248_v14 }
 0x169   :  { %v347_v25 = vmax.f32 %v267_v3, %v1218_v17  ;;  %v396_v26 = vadd.f32 %v373_v2, %v345_v18  ;;  %v397_v27 = vadd.f32 %v1718_v63, %v346_v19  ;;  %v1211_v28 = vrot.slane %v241_v1, 9  ;;  %v589_v17 = vld [vmem:[%s2155_s3 + $0xa8] sm:$0xff] }
 0x16a   :  { %v411_v29 = vmax.f32 %v395_v21, 0.0  ;;  %v1212_v30 = vrot.slane %v249_v22, 9  ;;  %v1213_v31 = vrot.slane %v248_v14, 9  ;;  %v1214_v32 = vrot.slane %v250_v24, 9 }
 0x16b   :  { %v412_v33 = vmax.f32 %v396_v26, 0.0  ;;  %v340_v34 = vmax.f32 %v241_v1, %v1211_v28  ;;  %v390_v35 = vadd.f32 %v374_v16, %v339_v36  ;;  %v405_v37 = vmax.f32 %v1738_v38, 0.0 }
 0x16c   :  { %v1774_v39 = vrot.slane %v411_v29, %v1723_v5  ;;  %v341_v60 = vmax.f32 %v249_v22, %v1212_v30  ;;  %v342_v2 = vmax.f32 %v248_v14, %v1213_v31  ;;  %v343_v40 = vmax.f32 %v250_v24, %v1214_v32  ;;  %v588_v14 = vld [vmem:[%s2155_s3 + $0xa0] sm:$0xff]  ;;  %v590_v31 = vld [vmem:[%s2155_s3 + $0xb0] sm:$0xff]  ;;  %v591_v32 = vld [vmem:[%s2155_s3 + $0xb8] sm:$0xff] }
 0x16d   :  { %v391_v41 = vadd.f32 %v1707_v59, %v340_v34  ;;  %v406_v42 = vmax.f32 %v390_v35, 0.0  ;;  %v455_v43 = vrot.slane %v404_v44, %v1723_v5  ;;  %v459_v46 = vrot.slane %v405_v37, %v1723_v5  ;;  %v873_v34 = vld [vmem:[%s2157_s5 + $0x88] sm:$0xff] }
 0x16e   :  { %v392_v47 = vadd.f32 %v371_v8, %v341_v60  ;;  %v393_v36 = vadd.f32 %v1714_v61, %v342_v2  ;;  %v394_v38 = vadd.f32 %v372_v12, %v343_v40  ;;  %v522_v48 = vsel %vm521_vm13, %v439_v62, %v435_v51 }
 0x16f   :  { %v407_v49 = vmax.f32 %v391_v41, 0.0  ;;  %v516_v50 = vrot.slane %v406_v42, %v1723_v5  ;;  %v523_v52 = vsel %vm488_vm12, %v443_v0, %v522_v48  ;;  %v547_v44 = vsel %vm490_vm14, %v1745_v45, %v546_v20 }
 0x170   :  { %v408_v53 = vmax.f32 %v392_v47, 0.0  ;;  %v409_v54 = vmax.f32 %v393_v36, 0.0  ;;  %v410_v59 = vmax.f32 %v394_v38, 0.0  ;;  %v524_v8 = vsel %vm490_vm14, %v1756_v10, %v523_v52 }
 0x171   :  { %v463_v61 = vrot.slane %v407_v49, %v1723_v5  ;;  %v525_v12 = vsel %vm492_vm15, %v1745_v45, %v524_v8  ;;  %v548_v51 = vsel %vm492_vm15, %v455_v43, %v547_v44  ;;  %v398_v56 = vadd.f32 %v374_v16, %v347_v25  ;;  %v874_v8 = vld [vmem:[%s2157_s5 + $0x90] sm:$0xff] }
 0x172   :  { %v467_v57 = vrot.slane %v408_v53, %v1723_v5  ;;  %v471_v62 = vrot.slane %v409_v54, %v1723_v5  ;;  %v475_v0 = vrot.slane %v410_v59, %v1723_v5  ;;  %v526_v1 = vsel %vm494_vm0, %v455_v43, %v525_v12  ;;  %v856_v53 = vld [vmem:[%s2157_s5] sm:$0xff]  ;;  %v857_v54 = vld [vmem:[%s2157_s5 + $0x8] sm:$0xff] }
 0x173   :  { %v527_v3 = vsel %vm496_vm1, %v459_v46, %v526_v1  ;;  %v549_v6 = vsel %vm494_vm0, %v459_v46, %v548_v51  ;;  %v413_v7 = vmax.f32 %v397_v27, 0.0  ;;  %v414_v9 = vmax.f32 %v398_v56, 0.0  ;;  %v858_v51 = vld [vmem:[%s2157_s5 + $0x10] sm:$0xff]  ;;  %v859_v56 = vld [vmem:[%s2157_s5 + $0x18] sm:$0xff] }
 0x174   :  { %v500_v11 = vsel %vm488_vm12, %v467_v57, %v463_v61  ;;  %v551_v13 = vsel %vm521_vm13, %v471_v62, %v467_v57  ;;  %v528_v63 = vsel %vm498_vm2, %v516_v50, %v527_v3  ;;  %v550_v16 = vsel %vm496_vm1, %v516_v50, %v549_v6  ;;  %v860_v3 = vld [vmem:[%s2157_s5 + $0x20] sm:$0xff]  ;;  %v861_v6 = vld [vmem:[%s2157_s5 + $0x28] sm:$0xff] }
 0x175   :  { %v501_v18 = vsel %vm490_vm14, %v471_v62, %v500_v11  ;;  %v552_v19 = vsel %vm488_vm12, %v475_v0, %v551_v13  ;;  %560 = vst.msk [vmem:[#allocation3 + $0x8] sm:$0x7f] %vm559_vm3, %v550_v16  ;;  %536 = vrot.lane.b32.xlu0 %v528_v63, %s1541_s22  ;;  %v483_v20 = vrot.slane %v412_v33, %v1723_v5  ;;  %v879_v11 = vld [vmem:[%s2157_s5 + $0xb8] sm:$0xff]  ;;  %v862_v63 = vld [vmem:[%s2157_s5 + $0x30] sm:$0xff] }
 0x176   :  { %v487_v21 = vrot.slane %v413_v7, %v1723_v5  ;;  %v520_v22 = vrot.slane %v414_v9, %v1723_v5  ;;  %v529_v24 = vsel %vm521_vm13, %v467_v57, %v463_v61  ;;  %v553_v25 = vsel %vm490_vm14, %v1774_v39, %v552_v19  ;;  %v875_v61 = vld [vmem:[%s2157_s5 + $0x98] sm:$0xff]  ;;  %v878_v9 = vld [vmem:[%s2157_s5 + $0xb0] sm:$0xff] }
 0x177   :  { %v493_v26 = vsel %vm492_vm15, %v1756_v10, %v1762_v15  ;;  %v530_v27 = vsel %vm488_vm12, %v471_v62, %v529_v24  ;;  %v554_v28 = vsel %vm492_vm15, %v483_v20, %v553_v25  ;;  %v1408_v30 = vpack.c.bf16 %v589_v17, %v588_v14  ;;  %v876_v62 = vld [vmem:[%s2157_s5 + $0xa0] sm:$0xff]  ;;  %v863_v16 = vld [vmem:[%s2157_s5 + $0x38] sm:$0xff]  ;;  %v882_v24 = vld [vmem:[%s2157_s5 + $0xd0] sm:$0xff] }
 0x178   :  { %v495_v29 = vsel %vm494_vm0, %v1745_v45, %v493_v26  ;;  %v531_v33 = vsel %vm490_vm14, %v475_v0, %v530_v27  ;;  %v555_v10 = vsel %vm494_vm0, %v487_v21, %v554_v28  ;;  %v872_v45 = vld [vmem:[%s2157_s5 + $0x80] sm:$0xff]  ;;  %v502_v2 = vsel %vm492_vm15, %v475_v0, %v501_v18  ;;  %v877_v0 = vld [vmem:[%s2157_s5 + $0xa8] sm:$0xff]  ;;  %v883_v25 = vld [vmem:[%s2157_s5 + $0xd8] sm:$0xff] }
 0x179   :  { %v497_v15 = vsel %vm496_vm1, %v455_v43, %v495_v29  ;;  %v532_v35 = vsel %vm492_vm15, %v1774_v39, %v531_v33  ;;  %v556_v37 = vsel %vm496_vm1, %v520_v22, %v555_v10  ;;  %1409 = vmatpush1.bf16.msra.mxu1 %v1408_v30  ;;  %v1411_v41 = vpack.c.bf16 %v591_v32, %v590_v31  ;;  %v880_v17 = vld [vmem:[%s2157_s5 + $0xc0] sm:$0xff]  ;;  %v881_v18 = vld [vmem:[%s2157_s5 + $0xc8] sm:$0xff]  ;;  %v866_v27 = vld [vmem:[%s2157_s5 + $0x50] sm:$0xff] }
 0x17a   :  { %v499_v60 = vsel %vm498_vm2, %v459_v46, %v497_v15  ;;  %v533_v40 = vsel %vm494_vm0, %v483_v20, %v532_v35  ;;  %561 = vst.msk [vmem:[#allocation3 + $0x18] sm:$0x7f] %vm559_vm3, %v556_v37  ;;  %1410 = vmatprep.subr.bf16.mxu1 %v1539_v23  ;;  %v503_v42 = vsel %vm494_vm0, %v1774_v39, %v502_v2  ;;  %v867_v28 = vld [vmem:[%s2157_s5 + $0x58] sm:$0xff]  ;;  %v884_v29 = vld [vmem:[%s2157_s5 + $0xe0] sm:$0xff]  ;;  %v885_v31 = vld [vmem:[%s2157_s5 + $0xe8] sm:$0xff] }
 0x17b   :  { %509 = vst.msk [vmem:[#allocation3] sm:$0xfe] %vm508_vm4, %v499_v60  ;;  %v1413_v43 = vpack.c.bf16 %v873_v34, %v872_v45  ;;  %v534_v47 = vsel %vm496_vm1, %v487_v21, %v533_v40  ;;  %v504_v46 = vsel %vm496_vm1, %v483_v20, %v503_v42  ;;  %v1415_v59 = vpack.c.bf16 %v857_v54, %v856_v53  ;;  %v864_v20 = vld [vmem:[%s2157_s5 + $0x40] sm:$0xff]  ;;  %v869_v33 = vld [vmem:[%s2157_s5 + $0x68] sm:$0xff]  ;;  %v886_v15 = vld [vmem:[%s2157_s5 + $0xf0] sm:$0xff] }
 0x17c   :  { %v535_v36 = vsel %vm498_vm2, %v520_v22, %v534_v47  ;;  %v565_v38 = vld [vmem:[#allocation3 + $0x8] sm:$0xff]  ;;  %v505_v48 = vsel %vm498_vm2, %v487_v21, %v504_v46  ;;  %v1417_v12 = vpack.c.bf16 %v875_v61, %v874_v8  ;;  %v1419_v57 = vpack.c.bf16 %v859_v56, %v858_v51  ;;  %v868_v32 = vld [vmem:[%s2157_s5 + $0x60] sm:$0xff]  ;;  %v887_v45 = vld [vmem:[%s2157_s5 + $0xf8] sm:$0xff] }
 0x17d   :  { %1414 = vmatprep.subr.bf16.mxu0 %v1413_v43  ;;  %538 = vrot.lane.b32.xlu1 %v535_v36, %s1541_s22  ;;  %510 = vst.msk [vmem:[#allocation3 + $0x10] sm:$0xfe] %vm508_vm4, %v505_v48  ;;  %v1421_v1 = vpack.c.bf16 %v877_v0, %v876_v62  ;;  %v1423_v7 = vpack.c.bf16 %v861_v6, %v860_v3  ;;  %v865_v21 = vld [vmem:[%s2157_s5 + $0x48] sm:$0xff]  ;;  %v870_v37 = vld [vmem:[%s2157_s5 + $0x70] sm:$0xff]  ;;  %v871_v60 = vld [vmem:[%s2157_s5 + $0x78] sm:$0xff] }
 0x17e   :  { %1220 = vmatprep.mubr.msk.f32.mxu1 %vm592_vm5, %v565_v38  ;;  %1412 = vmatpush1.bf16.msra.mxu1 %v1411_v41  ;;  %v1425_v13 = vpack.c.bf16 %v879_v11, %v878_v9  ;;  %v1427_v14 = vpack.c.bf16 %v863_v16, %v862_v63  ;;  %v1429_v19 = vpack.c.bf16 %v881_v18, %v880_v17  ;;  %v904_v40 = vld [vmem:[%s2157_s5 + $0x180] sm:$0xff]  ;;  %v905_v41 = vld [vmem:[%s2157_s5 + $0x188] sm:$0xff] }
 0x17f   :  { %1477 = vmatprep.subr.bf16.mxu1 %v1539_v23  ;;  %1416 = vmatpush3.bf16.msra.mxu0 %v1415_v59  ;;  %v1431_v22 = vpack.c.bf16 %v865_v21, %v864_v20  ;;  %v1433_v26 = vpack.c.bf16 %v883_v25, %v882_v24  ;;  %v1435_v30 = vpack.c.bf16 %v867_v28, %v866_v27  ;;  %v1230_v43 = vld [vmem:[%s2156_s4] ss:$0 sm:$0xff] }
 0x180   :  { %1418 = vmatprep.subr.bf16.mxu0 %v1417_v12  ;;  %v1437_v10 = vpack.c.bf16 %v885_v31, %v884_v29  ;;  %v1439_v34 = vpack.c.bf16 %v869_v33, %v868_v32  ;;  %v1441_v35 = vpack.c.bf16 %v887_v45, %v886_v15  ;;  %v1443_v2 = vpack.c.bf16 %v871_v60, %v870_v37 }
 0x181   :  { %v567_v52 = vld [vmem:[#allocation3 + $0x18] sm:$0xff]  ;;  %v1445_v42 = vpack.c.bf16 %v905_v41, %v904_v40  ;;  %v763_v47 = vrot.slane %v1230_v43, %v1704_v58  ;;  %v1542_v33 = vmov 1935823168  }
 0x183   :  { %1420 = vmatpush3.bf16.msra.mxu0 %v1419_v57  ;;  %v773_v53 = vrot.slane %v763_v47, 1 }
 0x184   :  { %1422 = vmatprep.subr.bf16.mxu0 %v1421_v1 }
 0x187   :  { %1424 = vmatpush3.bf16.msra.mxu0 %v1423_v7 }
 0x188   :  { %1426 = vmatprep.subr.bf16.mxu0 %v1425_v13 }
 0x18b   :  { %1428 = vmatpush3.bf16.msra.mxu0 %v1427_v14 }
 0x18c   :  { %1430 = vmatprep.subr.bf16.mxu0 %v1429_v19 }
 0x18f   :  { %1432 = vmatpush3.bf16.msra.mxu0 %v1431_v22 }
 0x190   :  { %1434 = vmatprep.subr.bf16.mxu0 %v1433_v26 }
 0x193   :  { %1436 = vmatpush3.bf16.msra.mxu0 %v1435_v30 }
 0x194   :  { %1438 = vmatprep.subr.bf16.mxu0 %v1437_v10  ;;  %v850_v10 = vunpack.c.l.s4 %v1542_v33 }
 0x197   :  { %1440 = vmatpush3.bf16.msra.mxu0 %v1439_v34 }
 0x198   :  { %1442 = vmatprep.subr.bf16.mxu0 %v1441_v35 }
 0x19b   :  { %1444 = vmatpush3.bf16.msra.mxu0 %v1443_v2 }
 0x19c   :  { %1446 = vmatprep.subr.bf16.mxu0 %v1445_v42 }
 0x1e7   :  { %v537_v39 = vpop.permute.xlu0 %536 }
 0x1e8   :  { %543 = vst.msk [vmem:[#allocation3] sm:$0xff] %vm542_vm6, %v537_v39  ;;  %v771_v39 = vcombine.high %v763_v47, %v763_v47 }
 0x1ea   :  { %v774_v12 = vrot.slane %v771_v39, 1 }
 0x1ef   :  { %v539_v49 = vpop.permute.xlu1 %538  ;;  %v564_v50 = vld [vmem:[#allocation3] sm:$0xff] }
 0x1f0   :  { %544 = vst.msk [vmem:[#allocation3 + $0x10] sm:$0xff] %vm542_vm6, %v539_v49  ;;  %664 = vmatmul.mubr.f32.vlgmr.msra.gmra.mrb[0].mxu1 %v564_v50  ;;  %v756_v49 = vcombine.high %v1230_v43, %v1230_v43 }
 0x1f1   :  { %1221 = vmatprep.mubr.msk.f32.mxu1 %vm592_vm5, %v567_v52 }
 0x1f2   :  { %v770_v51 = vrot.slane %v756_v49, %v1704_v58 }
 0x1f4   :  { %v772_v18 = vcombine.high %v770_v51, %v770_v51  ;;  %v775_v26 = vrot.slane %v770_v51, 1 }
 0x1f6   :  { %v776_v32 = vrot.slane %v772_v18, 1 }
 0x1f7   :  { %v566_v44 = vld [vmem:[#allocation3 + $0x10] sm:$0xff] }
 0x1f8   :  { %669 = vmatmul.mubr.f32.gmra.mrb[2].mxu1 %v566_v44 }
 0x1f9   :  { %1368 = vmatprep.mubr.msk.f32.mxu1 %vm1543_vm7, %v1537_v4 }
 0x2c3   :  { %v665_v46 = vpop.f32.mrb[0].mxu1 }
 0x2c4   :  { %v676_v36 = vcombine.high %v665_v46, %v665_v46  ;;  %v683_v38 = vrot.slane %v665_v46, %v1704_v58  ;;  %v667_v48 = vpop.f32.mrb[1].mxu1 }
 0x2c6   :  { %v690_v50 = vrot.slane %v676_v36, %v1704_v58  ;;  %v691_v52 = vcombine.high %v683_v38, %v683_v38  ;;  %v1222_v44 = vrot.slane %v683_v38, 9 }
 0x2c8   :  { %v692_v54 = vcombine.high %v690_v50, %v690_v50  ;;  %v1223_v59 = vrot.slane %v691_v52, 9  ;;  %v1224_v8 = vrot.slane %v690_v50, 9  ;;  %v742_v61 = vmax.f32 %v683_v38, %v1222_v44 }
 0x2ca   :  { %v1225_v56 = vrot.slane %v692_v54, 9  ;;  %v743_v57 = vmax.f32 %v691_v52, %v1223_v59  ;;  %v744_v62 = vmax.f32 %v690_v50, %v1224_v8  ;;  %v785_v0 = vadd.f32 %v763_v47, %v742_v61 }
 0x2cb   :  { %v670_v1 = vpop.f32.mrb[2].mxu1  ;;  %v851_v47 = vunpack.c.0.s8 %v850_v10 }
 0x2cc   :  { %v745_v3 = vmax.f32 %v692_v54, %v1225_v56  ;;  %v786_v6 = vadd.f32 %v773_v53, %v743_v57  ;;  %v787_v7 = vadd.f32 %v771_v39, %v744_v62  ;;  %v793_v9 = vmax.f32 %v785_v0, 0.0  ;;  %v672_v11 = vpop.f32.mrb[3].mxu1  ;;  %v889_v56 = vld [vmem:[%s2157_s5 + $0x108] sm:$0xff]  ;;  %v907_v62 = vld [vmem:[%s2157_s5 + $0x198] sm:$0xff] }
 0x2cd   :  { %v693_v13 = vcombine.high %v670_v1, %v670_v1  ;;  %v700_v63 = vrot.slane %v670_v1, %v1704_v58  ;;  %v854_v53 = vsub.s32 %v851_v47, %v1698_v55 }
 0x2ce   :  { %v788_v16 = vadd.f32 %v774_v12, %v745_v3  ;;  %v794_v14 = vmax.f32 %v786_v6, 0.0  ;;  %v795_v17 = vmax.f32 %v787_v7, 0.0  ;;  %v812_v24 = vrot.slane %v793_v9, %v1723_v5  ;;  %v890_v7 = vld [vmem:[%s2157_s5 + $0x110] sm:$0xff]  ;;  %v891_v9 = vld [vmem:[%s2157_s5 + $0x118] sm:$0xff] }
 0x2cf   :  { %v707_v19 = vrot.slane %v693_v13, %v1704_v58  ;;  %v708_v20 = vcombine.high %v700_v63, %v700_v63  ;;  %v1226_v21 = vrot.slane %v700_v63, 9  ;;  %v908_v13 = vld [vmem:[%s2157_s5 + $0x1a0] sm:$0xff] }
 0x2d0   :  { %v796_v22 = vmax.f32 %v788_v16, 0.0  ;;  %v816_v25 = vrot.slane %v794_v14, %v1723_v5  ;;  %v820_v31 = vrot.slane %v795_v17, %v1723_v5  ;;  %v892_v14 = vld [vmem:[%s2157_s5 + $0x120] sm:$0xff]  ;;  %v893_v17 = vld [vmem:[%s2157_s5 + $0x128] sm:$0xff] }
 0x2d1   :  { %v709_v27 = vcombine.high %v707_v19, %v707_v19  ;;  %v1227_v28 = vrot.slane %v708_v20, 9  ;;  %v1228_v29 = vrot.slane %v707_v19, 9  ;;  %v746_v30 = vmax.f32 %v700_v63, %v1226_v21  ;;  %v909_v63 = vld [vmem:[%s2157_s5 + $0x1a8] sm:$0xff] }
 0x2d2   :  { %v841_v15 = vsel %vm521_vm13, %v816_v25, %v812_v24  ;;  %v824_v60 = vrot.slane %v796_v22, %v1723_v5  ;;  %v1453_v16 = vpack.c.bf16 %v909_v63, %v908_v13  ;;  %v894_v22 = vld [vmem:[%s2157_s5 + $0x130] sm:$0xff]  ;;  %v895_v24 = vld [vmem:[%s2157_s5 + $0x138] sm:$0xff]  ;;  %v912_v25 = vld [vmem:[%s2157_s5 + $0x1c0] sm:$0xff] }
 0x2d3   :  { %v1229_v45 = vrot.slane %v709_v27, 9  ;;  %v747_v34 = vmax.f32 %v708_v20, %v1227_v28  ;;  %v748_v35 = vmax.f32 %v707_v19, %v1228_v29  ;;  %v789_v37 = vadd.f32 %v770_v51, %v746_v30  ;;  %v888_v51 = vld [vmem:[%s2157_s5 + $0x100] sm:$0xff]  ;;  %v911_v19 = vld [vmem:[%s2157_s5 + $0x1b8] sm:$0xff]  ;;  %v897_v30 = vld [vmem:[%s2157_s5 + $0x148] sm:$0xff] }
 0x2d4   :  { %v842_v42 = vsel %vm488_vm12, %v820_v31, %v841_v15  ;;  %v1447_v1 = vpack.c.bf16 %v889_v56, %v888_v51  ;;  %v1455_v20 = vpack.c.bf16 %v893_v17, %v892_v14  ;;  %v896_v29 = vld [vmem:[%s2157_s5 + $0x140] sm:$0xff]  ;;  %v914_v31 = vld [vmem:[%s2157_s5 + $0x1d0] sm:$0xff]  ;;  %v1099_v56 = vld [vmem:[%s2159_s7 + $0x48] sm:$0xff] }
 0x2d5   :  { %v749_v2 = vmax.f32 %v709_v27, %v1229_v45  ;;  %v790_v40 = vadd.f32 %v775_v26, %v747_v34  ;;  %v791_v41 = vadd.f32 %v772_v18, %v748_v35  ;;  %v797_v43 = vmax.f32 %v789_v37, 0.0  ;;  %v910_v18 = vld [vmem:[%s2157_s5 + $0x1b0] sm:$0xff]  ;;  %v913_v26 = vld [vmem:[%s2157_s5 + $0x1c8] sm:$0xff]  ;;  %v899_v45 = vld [vmem:[%s2157_s5 + $0x158] sm:$0xff] }
 0x2d6   :  { %v843_v52 = vsel %vm490_vm14, %v824_v60, %v842_v42  ;;  %v1457_v21 = vpack.c.bf16 %v911_v19, %v910_v18  ;;  %v1459_v27 = vpack.c.bf16 %v895_v24, %v894_v22  ;;  %v1461_v28 = vpack.c.bf16 %v913_v26, %v912_v25  ;;  %v898_v15 = vld [vmem:[%s2157_s5 + $0x150] sm:$0xff]  ;;  %v916_v34 = vld [vmem:[%s2157_s5 + $0x1e0] sm:$0xff]  ;;  %v917_v35 = vld [vmem:[%s2157_s5 + $0x1e8] sm:$0xff] }
 0x2d7   :  { %v792_v46 = vadd.f32 %v776_v32, %v749_v2  ;;  %v798_v36 = vmax.f32 %v790_v40, 0.0  ;;  %v799_v38 = vmax.f32 %v791_v41, 0.0  ;;  %v828_v48 = vrot.slane %v797_v43, %v1723_v5  ;;  %v915_v32 = vld [vmem:[%s2157_s5 + $0x1d8] sm:$0xff]  ;;  %v900_v2 = vld [vmem:[%s2157_s5 + $0x160] sm:$0xff]  ;;  %v901_v40 = vld [vmem:[%s2157_s5 + $0x168] sm:$0xff] }
 0x2d8   :  { %v1463_v33 = vpack.c.bf16 %v897_v30, %v896_v29  ;;  %v1465_v10 = vpack.c.bf16 %v915_v32, %v914_v31  ;;  %v1467_v37 = vpack.c.bf16 %v899_v45, %v898_v15  ;;  %v1469_v60 = vpack.c.bf16 %v917_v35, %v916_v34  ;;  %v918_v41 = vld [vmem:[%s2157_s5 + $0x1f0] sm:$0xff]  ;;  %v919_v42 = vld [vmem:[%s2157_s5 + $0x1f8] sm:$0xff]  ;;  %v1098_v51 = vld [vmem:[%s2159_s7 + $0x40] sm:$0xff] }
 0x2d9   :  { %v800_v39 = vmax.f32 %v792_v46, 0.0  ;;  %v832_v49 = vrot.slane %v798_v36, %v1723_v5  ;;  %v836_v50 = vrot.slane %v799_v38, %v1723_v5  ;;  %v844_v44 = vsel %vm492_vm15, %v828_v48, %v843_v52  ;;  %v902_v46 = vld [vmem:[%s2157_s5 + $0x170] sm:$0xff]  ;;  %v903_v36 = vld [vmem:[%s2157_s5 + $0x178] sm:$0xff]  ;;  %v1090_v48 = vld [vmem:[%s2159_s7] sm:$0xff] }
 0x2da   :  { %v1471_v43 = vpack.c.bf16 %v901_v40, %v900_v2  ;;  %v1473_v47 = vpack.c.bf16 %v919_v42, %v918_v41  ;;  %v1475_v38 = vpack.c.bf16 %v903_v36, %v902_v46  ;;  %v1093_v52 = vld [vmem:[%s2159_s7 + $0x18] sm:$0xff] }
 0x2db   :  { %v840_v54 = vrot.slane %v800_v39, %v1723_v5  ;;  %v845_v59 = vsel %vm494_vm0, %v832_v49, %v844_v44  ;;  %v906_v5 = vld [vmem:[%s2157_s5 + $0x190] sm:$0xff]  ;;  %v1091_v39 = vld [vmem:[%s2159_s7 + $0x8] sm:$0xff] }
 0x2dc   :  { %v846_v8 = vsel %vm496_vm1, %v836_v50, %v845_v59  ;;  %v1449_v6 = vpack.c.bf16 %v907_v62, %v906_v5  ;;  %v1092_v49 = vld [vmem:[%s2159_s7 + $0x10] sm:$0xff]  ;;  %v1478_v50 = vpack.c.bf16 %v1091_v39, %v1090_v48  ;;  %v1101_v5 = vld [vmem:[%s2159_s7 + $0x58] sm:$0xff] }
 0x2dd   :  { %v847_v61 = vsel %vm498_vm2, %v840_v54, %v846_v8  ;;  %v1481_v44 = vpack.c.bf16 %v1093_v52, %v1092_v49  ;;  %v1095_v54 = vld [vmem:[%s2159_s7 + $0x28] sm:$0xff]  ;;  %v1096_v8 = vld [vmem:[%s2159_s7 + $0x30] sm:$0xff] }
 0x2de   :  { %v855_v12 = vrot.slane %v847_v61, %v854_v53  ;;  %1479 = vmatpush3.bf16.msra.mxu1 %v1478_v50  ;;  %v1094_v53 = vld [vmem:[%s2159_s7 + $0x20] sm:$0xff]  ;;  %v1097_v61 = vld [vmem:[%s2159_s7 + $0x38] sm:$0xff] }
 0x2df   :  { %1480 = vmatprep.subr.bf16.mxu1 %v1539_v23  ;;  %v1484_v59 = vpack.c.bf16 %v1095_v54, %v1094_v53 }
 0x2e0   :  { %v935_v57 = vrot.slane %v855_v12, %v1704_v58  ;;  %v928_v55 = vcombine.high %v855_v12, %v855_v12  ;;  %v1487_v12 = vpack.c.bf16 %v1097_v61, %v1096_v8 }
 0x2e2   :  { %v943_v0 = vcombine.high %v935_v57, %v935_v57  ;;  %v942_v3 = vrot.slane %v928_v55, %v1704_v58  ;;  %v1451_v58 = vpack.c.bf16 %v891_v9, %v890_v7  ;;  %1482 = vmatpush3.bf16.msra.mxu1 %v1481_v44  ;;  %v1100_v55 = vld [vmem:[%s2159_s7 + $0x50] sm:$0xff]  ;;  %v1105_v7 = vld [vmem:[%s2159_s7 + $0x78] sm:$0xff] }
 0x2e3   :  { %1483 = vmatprep.subr.bf16.mxu1 %v1539_v23  ;;  %v1493_v62 = vpack.c.bf16 %v1101_v5, %v1100_v55 }
 0x2e4   :  { %1013 = vmatprep.mubr.f32.mxu0 %v943_v0  ;;  %v944_v11 = vcombine.high %v942_v3, %v942_v3  ;;  %v1102_v0 = vld [vmem:[%s2159_s7 + $0x60] sm:$0xff] }
 0x2e5   :  { %1014 = vmatmul.mubr.f32.vlgmr.msra.gmra.mrb[4].mxu0 %v935_v57  ;;  %v1490_v57 = vpack.c.bf16 %v1099_v56, %v1098_v51 }
 0x2e6   :  { %1448 = vmatpush3.bf16.msra.mxu0 %v1447_v1  ;;  %1083 = vmatprep.mubr.f32.mxu0 %v944_v11  ;;  %v1103_v1 = vld [vmem:[%s2159_s7 + $0x68] sm:$0xff] }
 0x2e7   :  { %1450 = vmatprep.subr.bf16.mxu0 %v1449_v6  ;;  %1485 = vmatpush3.bf16.msra.mxu1 %v1484_v59  ;;  %v1104_v6 = vld [vmem:[%s2159_s7 + $0x70] sm:$0xff] }
 0x2e8   :  { %1486 = vmatprep.subr.bf16.mxu1 %v1539_v23  ;;  %v1499_v9 = vpack.c.bf16 %v1105_v7, %v1104_v6 }
 0x2ea   :  { %1452 = vmatpush3.bf16.msra.mxu0 %v1451_v58 }
 0x2eb   :  { %1454 = vmatprep.subr.bf16.mxu0 %v1453_v16  ;;  %1488 = vmatpush3.bf16.msra.mxu1 %v1487_v12 }
 0x2ec   :  { %1489 = vmatprep.subr.bf16.mxu1 %v1539_v23 }
 0x2ee   :  { %1456 = vmatpush3.bf16.msra.mxu0 %v1455_v20  ;;  %v1232_v20 = vld [vmem:[%s2160_s8] ss:$0 sm:$0xff] }
 0x2ef   :  { %1458 = vmatprep.subr.bf16.mxu0 %v1457_v21  ;;  %1491 = vmatpush3.bf16.msra.mxu1 %v1490_v57 }
 0x2f0   :  { %1492 = vmatprep.subr.bf16.mxu1 %v1539_v23 }
 0x2f2   :  { %1460 = vmatpush3.bf16.msra.mxu0 %v1459_v27 }
 0x2f3   :  { %1462 = vmatprep.subr.bf16.mxu0 %v1461_v28  ;;  %1494 = vmatpush3.bf16.msra.mxu1 %v1493_v62 }
 0x2f4   :  { %1495 = vmatprep.subr.bf16.mxu1 %v1539_v23 }
 0x2f6   :  { %1464 = vmatpush3.bf16.msra.mxu0 %v1463_v33 }
 0x2f7   :  { %1466 = vmatprep.subr.bf16.mxu0 %v1465_v10 }
 0x2fa   :  { %1468 = vmatpush3.bf16.msra.mxu0 %v1467_v37 }
 0x2fb   :  { %1470 = vmatprep.subr.bf16.mxu0 %v1469_v60 }
 0x2fe   :  { %1472 = vmatpush3.bf16.msra.mxu0 %v1471_v43 }
 0x2ff   :  { %1474 = vmatprep.subr.bf16.mxu0 %v1473_v47 }
 0x302   :  { %1476 = vmatpush3.bf16.msra.mxu0 %v1475_v38 }
 0x305   :  { %1084 = vmatmul.mubr.f32.vlgmr.msra.gmra.mrb[6].mxu0 %v942_v3  ;;  %v1496_v3 = vpack.c.bf16 %v1103_v1, %v1102_v0 }
 0x307   :  { %1497 = vmatpush3.bf16.msra.mxu1 %v1496_v3 }
 0x308   :  { %1498 = vmatprep.subr.bf16.mxu1 %v1539_v23  ;;  %v1231_v23 = vld [vmem:[%s2158_s6] ss:$0 sm:$0xff] }
 0x30b   :  { %1500 = vmatpush3.bf16.msra.mxu1 %v1499_v9 }
 0x3b8   :  { %v1271_v11 = vpop.f32.mrb[4].mxu0 }
 0x3b9   :  { %v1272_v13 = vpop.f32.mrb[5].mxu0 }
 0x3ba   :  { %v1273_v63 = vadd.f32 %v1272_v13, %v1271_v11 }
 0x3bc   :  { %v1016_v14 = vadd.f32 %v1273_v63, %v1231_v23 }
 0x3d8   :  { %v1306_v58 = vpop.f32.mrb[6].mxu0 }
 0x3d9   :  { %v1307_v16 = vpop.f32.mrb[7].mxu0 }
 0x3da   :  { %v1308_v17 = vadd.f32 %v1307_v16, %v1306_v58 }
 0x3dc   :  { %v1086_v18 = vadd.f32 %v1308_v17, %v1016_v14 }
 0x3de   :  { %v1089_v19 = vmax.f32 %v1086_v18, 0.0 }
 0x3e0   :  { %1369 = vmatmul.mubr.f32.vlgmr.msra.gmra.mrb[4].mxu1 %v1089_v19 }
 0x4b3   :  { %v1179_v4 = vpop.f32.mrb[4].mxu1 }
 0x4b4   :  { %v1180_v21 = vadd.f32 %v1232_v20, %v1179_v4  ;;  %v1370_v22 = vpop.f32.mrb[5].mxu1 }
 0x4b6   :  { %1183 = vst [vmem:[#allocation4] sm:$0x3] %v1180_v21 }
 0x4b7   :  { %1522 = shalt.err (!%p1519_p4)
}
 0x4b8   :  { %s1523_s16 = scalar_lea.hbm %s2161_s9, 32 }
 0x4b9   :  { %p1524_p5 = scmp.ne.s32.totalorder %s2161_s9, %s1523_s16  ;;  %p1527_p6 = scmp.lt.u32.totalorder %s1523_s16, %s2161_s9 }
 0x4bb   :  { %p1529_p7 = pnand %p1527_p6, %p1524_p5 }
 0x4bd   :  { %1532 = shalt.err (!%p1529_p7)
}
 0x4be   :  { %1193 = dma.vmem_to_hbm [thread:$0]  %s1191_s13, 32, %s2161_s9, [#allocation5]  }
 0x4bf   :  { %1533 = dma.done.wait [#allocation5], 32  }
 0x4c0   :  { %1534 = vsyncadd [#allocation5], 4294967264 }
 0x4c1   :  { %1197 = vsyncpa [#allocation5], 1 }

</bundles_post_ra>
